<compile_context>
chip_gen: v5e
topology: v5e:2x2
jax: 0.10.0
libtpu: 0.0.40
codegen_flags: <defaults>
</compile_context>

<pallas_src>
import functools
import math

import jax
import jax.numpy as jnp
from jax.experimental import pallas as pl
from jax.experimental.pallas import tpu as pltpu


# Safe on v5e/v6e (128 MiB physical) and v7x (64 MiB physical) alike.
_VMEM_LIMIT_BYTES = 32 * 1024 * 1024


def _maybe_dropout(x, seed_ref, training, rate):
    """F.dropout semantics: zero with prob `rate`, scale kept values by 1/(1-rate)."""
    if not (training and rate > 0.0):
        return x
    # Runtime seed (SMEM scalar) + grid position -> independent stream per tile.
    pltpu.prng_seed(seed_ref[0] + pl.program_id(0))
    bits = pltpu.bitcast(pltpu.prng_random_bits(x.shape), jnp.uint32)
    # Exponent trick: mantissa fill gives [1, 2); subtract 1 -> uniform [0, 1).
    u = pltpu.bitcast((bits >> 9) | jnp.uint32(0x3F800000), jnp.float32) - 1.0
    keep = u >= rate
    return jnp.where(keep, x * (1.0 / (1.0 - rate)), 0.0)


# --------------------------------------------------------------------------------------
# Small-vocab path: per-tile exact one-hot matmul against the VMEM-resident table.
# --------------------------------------------------------------------------------------
def _onehot_kernel(seed_ref, idx_ref, w_ref, o_ref, *, training, dropout_rate):
    idx = idx_ref[...]                                     # (TN, 1) int32 token ids
    w = w_ref[...]                                         # (V, D) f32 table (resident)
    tn = idx.shape[0]
    v = w.shape[0]
    # Exact row lookup as a one-hot matmul on the otherwise-idle MXU (one 1.0 per row).
    # Out-of-range ids match nothing and yield a zero row (nn.Embedding would error).
    cols = jax.lax.broadcasted_iota(jnp.int32, (tn, v), 1)
    onehot = (cols == idx).astype(w.dtype)                 # keep f32: bit-exact lookup
    out = jnp.dot(onehot, w, preferred_element_type=jnp.float32)
    out = _maybe_dropout(out, seed_ref, training, dropout_rate)
    o_ref[...] = out.astype(o_ref.dtype)


def _embedding_onehot(idx, weight, seed_arr, dropout, training):
    (n,) = idx.shape
    v, d = weight.shape
    tn = 256                                   # multiple of 256: fills v6e/v7x MXU passes
    n_pad = pl.cdiv(n, tn) * tn
    idx_p = jnp.zeros((n_pad, 1), jnp.int32).at[:n, 0].set(idx)   # pad with padding_idx 0

    out = pl.pallas_call(
        functools.partial(_onehot_kernel, training=training, dropout_rate=dropout),
        out_shape=jax.ShapeDtypeStruct((n_pad, d), jnp.float32),
        grid=(n_pad // tn,),
        in_specs=[
            pl.BlockSpec(memory_space=pltpu.MemorySpace.SMEM),   # seed scalar
            pl.BlockSpec((tn, 1), lambda i: (i, 0)),             # token-id tile
            pl.BlockSpec((v, d), lambda i: (0, 0)),              # table: fetched once, resident
        ],
        out_specs=pl.BlockSpec((tn, d), lambda i: (i, 0)),       # lane-dense (D = 128)
        compiler_params=pltpu.CompilerParams(
            dimension_semantics=("parallel",),                   # v7x megacore sharding
            vmem_limit_bytes=_VMEM_LIMIT_BYTES,
        ),
    )(seed_arr, idx_p, weight)
    return out[:n]


# --------------------------------------------------------------------------------------
# Large-vocab path: scalar-prefetch gather (no one-hot, no O(N*V*D) matmul).
# --------------------------------------------------------------------------------------
def _gather_kernel(ids_ref, seed_ref, w_ref, o_ref, *, tokens_per_tile, training,
                   dropout_rate):
    base = pl.program_id(0) * tokens_per_tile

    def body(j, carry):
        row = w_ref[pl.ds(ids_ref[base + j], 1), :]        # (1, D) dynamic row read
        o_ref[pl.ds(j, 1), :] = row.astype(o_ref.dtype)
        return carry

    jax.lax.fori_loop(0, tokens_per_tile, body, 0)

    if training and dropout_rate > 0.0:
        o_ref[...] = _maybe_dropout(o_ref[...], seed_ref, training, dropout_rate)


def _embedding_gather(idx, weight, seed_arr, dropout, training):
    (n,) = idx.shape
    v, d = weight.shape
    tg = 128                                   # tokens gathered per grid step (multiple of 8)
    n_pad = pl.cdiv(n, tg) * tg
    idx_p = jnp.zeros((n_pad,), jnp.int32).at[:n].set(idx)   # pad with padding_idx 0

    # TODO(synk): for tables too large for VMEM, switch this path to a manual HBM->VMEM
    # DMA gather (memory_space=pl.ANY + pltpu.make_async_copy double-buffering).
    grid_spec = pltpu.PrefetchScalarGridSpec(
        num_scalar_prefetch=1,                 # token ids land in SMEM before the grid runs
        grid=(n_pad // tg,),
        in_specs=[
            pl.BlockSpec(memory_space=pltpu.MemorySpace.SMEM),   # seed scalar
            pl.BlockSpec((v, d), lambda i, ids: (0, 0)),         # table: fetched once, resident
        ],
        out_specs=pl.BlockSpec((tg, d), lambda i, ids: (i, 0)),
    )
    out = pl.pallas_call(
        functools.partial(_gather_kernel, tokens_per_tile=tg,
                          training=training, dropout_rate=dropout),
        out_shape=jax.ShapeDtypeStruct((n_pad, d), jnp.float32),
        grid_spec=grid_spec,
        compiler_params=pltpu.CompilerParams(
            dimension_semantics=("parallel",),
            vmem_limit_bytes=_VMEM_LIMIT_BYTES,
        ),
    )(idx_p, seed_arr, weight)
    return out[:n]


# --------------------------------------------------------------------------------------
# Public wrapper: Embedding.forward == weight[x] followed by F.dropout.
# --------------------------------------------------------------------------------------
def embedding_forward(x, weight, *, dropout=0.0, training=False, seed=0,
                      gather_vocab_threshold=1024, force_gather=False):
    orig_shape = x.shape
    n = math.prod(orig_shape)
    v, d = weight.shape
    idx = x.reshape(n).astype(jnp.int32)
    seed_arr = jnp.asarray([seed], dtype=jnp.int32)

    if force_gather or v > gather_vocab_threshold:
        out = _embedding_gather(idx, weight, seed_arr, float(dropout), bool(training))
    else:
        out = _embedding_onehot(idx, weight, seed_arr, float(dropout), bool(training))
    return out.reshape(*orig_shape, d)


if __name__ == "__main__":
    key = jax.random.PRNGKey(0)
    k_w, k_x = jax.random.split(key)

    NUM_VOCAB = 100        # args.num_vocab
    EMBEDDING_DIM = 128    # args.embedding_dim (multiple of 128 -> lane-dense output)
    DROPOUT = 0.1          # args.dropout (identity in eval mode, the tested path)
    B, S = 2, 16

    # nn.Embedding(..., padding_idx=0): row 0 of the table is zeros.
    weight = jax.random.normal(k_w, (NUM_VOCAB, EMBEDDING_DIM), jnp.float32)
    weight = weight.at[0].set(0.0)

    x = jax.random.randint(k_x, (B, S), 0, NUM_VOCAB, dtype=jnp.int32)
    x = x.at[0, 0].set(0)          # exercise the padding index

    ref = weight[x]                # pure-JAX reference (dropout is identity in eval mode)

    # Small-vocab path: token-grid one-hot matmul against the VMEM-resident table.
    out = embedding_forward(x, weight, dropout=DROPOUT, training=False)
    jax.block_until_ready(out)
    assert out.shape == (B, S, EMBEDDING_DIM) and out.dtype == jnp.float32
    assert jnp.allclose(out, ref, atol=1e-6), float(jnp.max(jnp.abs(out - ref)))

    # Large-vocab path (forced here to exercise it): scalar-prefetch row gather.
    out_g = embedding_forward(x, weight, dropout=DROPOUT, training=False,
                              force_gather=True)
    jax.block_until_ready(out_g)
    assert bool(jnp.array_equal(out_g, ref))

    print("KERNEL_OK")
</pallas_src>

<mosaic_0001>
module attributes {stable_mosaic.version = 11 : i64} {
  func.func @_onehot_kernel(%arg0: i32, %arg1: memref<1xi32, #tpu.memory_space<smem>>, %arg2: memref<256x1xi32, #tpu.memory_space<vmem>>, %arg3: memref<100x128xf32, #tpu.memory_space<vmem>>, %arg4: memref<256x128xf32, #tpu.memory_space<vmem>>) attributes {dimension_semantics = [#tpu.dimension_semantics<parallel>], iteration_bounds = array<i64: 1>, scalar_prefetch = 0 : i64, scratch_operands = 0 : i64, tpu.core_type = #tpu.core_type<tc>, window_params = [{transform_indices = @transform_0, window_bounds = array<i64: 1>}, {transform_indices = @transform_1, window_bounds = array<i64: 256, 1>}, {pipeline_mode = #tpu.pipeline_mode<synchronous>, transform_indices = @transform_2, window_bounds = array<i64: 100, 128>}, {transform_indices = @transform_3, window_bounds = array<i64: 256, 128>}]} {
    %c0 = arith.constant 0 : index
    %c0_0 = arith.constant 0 : index
    %0 = vector.load %arg2[%c0, %c0_0] : memref<256x1xi32, #tpu.memory_space<vmem>>, vector<256x1xi32>
    %c0_1 = arith.constant 0 : index
    %c0_2 = arith.constant 0 : index
    %1 = vector.load %arg3[%c0_1, %c0_2] : memref<100x128xf32, #tpu.memory_space<vmem>>, vector<100x128xf32>
    %2 = tpu.iota {dimensions = array<i32: 1>} : vector<256x100xi32>
    %3 = vector.broadcast %0 : vector<256x1xi32> to vector<256x100xi32>
    %4 = arith.cmpi eq, %2, %3 : vector<256x100xi32>
    %5 = arith.extui %4 : vector<256x100xi1> to vector<256x100xi32>
    %6 = arith.sitofp %5 : vector<256x100xi32> to vector<256x100xf32>
    %cst = arith.constant dense<0.000000e+00> : vector<256x128xf32>
    %7 = tpu.matmul %6, %1, %cst {dimension_numbers = #tpu.dot_dimension_numbers<[1], [0], [0], [1], [0, 0, 1, 1], [], []>} : vector<256x100xf32>, vector<100x128xf32>, vector<256x128xf32> -> vector<256x128xf32>
    %c0_3 = arith.constant 0 : index
    %c0_4 = arith.constant 0 : index
    %8 = vector.load %arg4[%c0_3, %c0_4] : memref<256x128xf32, #tpu.memory_space<vmem>>, vector<256x128xf32>
    tpu.vector_store %arg4[%c0_3, %c0_4], %7 {strides = array<i32>} : memref<256x128xf32, #tpu.memory_space<vmem>>, vector<256x128xf32>,
    return
  }
  func.func @transform_0(%arg0: i32) -> i32 {
    %c0_i32 = arith.constant 0 : i32
    %c0_i32_0 = arith.constant 0 : i32
    return %c0_i32 : i32
  }
  func.func @transform_1(%arg0: i32) -> (i32, i32) {
    %c0_i32 = arith.constant 0 : i32
    %c0_i32_0 = arith.constant 0 : i32
    return %arg0, %c0_i32 : i32, i32
  }
  func.func @transform_2(%arg0: i32) -> (i32, i32) {
    %c0_i32 = arith.constant 0 : i32
    %c0_i32_0 = arith.constant 0 : i32
    %c0_i32_1 = arith.constant 0 : i32
    return %c0_i32, %c0_i32_0 : i32, i32
  }
  func.func @transform_3(%arg0: i32) -> (i32, i32) {
    %c0_i32 = arith.constant 0 : i32
    %c0_i32_0 = arith.constant 0 : i32
    return %arg0, %c0_i32 : i32, i32
  }
}

</mosaic_0001>

<bundles_post_ra>
// kernel: tpu_custom_call.1
= control target key start
LH: loop header
LB: loop body
LE: loop exit
PB: predicated region body
PF: predicated region fallthrough
CT: control target
= control target key end

     0   :  { %v657_v3 = vmov 0   ;;  %s918_s0 = inlined_call_operand.<no memory space> [shape: s32[1], index: 0, kind: input, shape index: {}]   ;;  %s919_s1 = inlined_call_operand.vmem [shape: s32[256,1], index: 1, kind: input, shape index: {}]   ;;  %s920_s2 = inlined_call_operand.vmem [shape: f32[100,128], index: 2, kind: input, shape index: {}]   ;;  %s921_s3 = inlined_call_operand.hbm [shape: f32[256,128], index: 3, kind: output, shape index: {}]  }
   0x1   :  { %v33_v0 = vld [vmem:[%s919_s1 + $0x88] sm:$0xff]  ;;  %v32_v1 = vld [vmem:[%s919_s1 + $0x80] sm:$0xff]  ;;  %630 = vset.pattern.permute.xlu2 %v657_v3  ;;  %629 = vset.pattern.permute.xlu1 %v657_v3 }
   0x2   :  { %v16_v2 = vld [vmem:[%s919_s1] sm:$0xff]  ;;  %628 = vset.pattern.permute.xlu0 %v657_v3  ;;  %115 = vperm.xlu2 %630, %v33_v0  }
   0x3   :  { %112 = vperm.xlu0 %628, %v32_v1   ;;  %64 = vperm.xlu1 %629, %v16_v2  }
   0x4   :  { %9 = vsyncpa [#allocation4], 0  ;;  %v41_v4 = vld [vmem:[%s919_s1 + $0xc8] sm:$0xff]  ;;  %v40_v5 = vld [vmem:[%s919_s1 + $0xc0] sm:$0xff]  ;;  %vm352_vm0 = vcmask 1043456   ;;  %v61_v48 = vlaneseq  ;;  %vm255_vm1 = vcmask 818176  }
   0x5   :  { %v24_v6 = vld [vmem:[%s919_s1 + $0x40] sm:$0xff]  ;;  %v34_v7 = vld [vmem:[%s919_s1 + $0x90] sm:$0xff]  ;;  %v17_v8 = vld [vmem:[%s919_s1 + $0x8] sm:$0xff]  ;;  %v658_v53 = vmov 0.0   ;;  %s507_s19 = sshll.u32 %s921_s3, 4  ;;  %s660_s20 = smov 128   ;;  %s508_s19 = int_to_ptr.hbm [resolvable:$true] %s507_s19 }
   0x6   :  { %v25_v9 = vld [vmem:[%s919_s1 + $0x48] sm:$0xff]  ;;  %v26_v10 = vld [vmem:[%s919_s1 + $0x50] sm:$0xff]  ;;  %v19_v13 = vld [vmem:[%s919_s1 + $0x18] sm:$0xff]  ;;  %v817_v49 = vand.u32 127, %v61_v48  ;;  %s661_s21 = smov 8  }
   0x7   :  { %v42_v11 = vld [vmem:[%s919_s1 + $0xd0] sm:$0xff]  ;;  %v35_v14 = vld [vmem:[%s919_s1 + $0x98] sm:$0xff]  ;;  %v44_v16 = vld [vmem:[%s919_s1 + $0xe0] sm:$0xff] }
   0x8   :  { %v18_v12 = vld [vmem:[%s919_s1 + $0x10] sm:$0xff]  ;;  %v43_v15 = vld [vmem:[%s919_s1 + $0xd8] sm:$0xff]  ;;  %v36_v18 = vld [vmem:[%s919_s1 + $0xa0] sm:$0xff] }
   0x9   :  { %v27_v17 = vld [vmem:[%s919_s1 + $0x58] sm:$0xff]  ;;  %v37_v19 = vld [vmem:[%s919_s1 + $0xa8] sm:$0xff]  ;;  %v20_v20 = vld [vmem:[%s919_s1 + $0x20] sm:$0xff] }
   0xa   :  { %139 = vperm.xlu2 %630, %v41_v4   ;;  %v28_v21 = vld [vmem:[%s919_s1 + $0x60] sm:$0xff]  ;;  %v29_v22 = vld [vmem:[%s919_s1 + $0x68] sm:$0xff]  ;;  %v59_v26 = vld [vmem:[%s920_s2 + $0x58] sm:$0xff] }
   0xb   :  { %136 = vperm.xlu0 %628, %v40_v5   ;;  %88 = vperm.xlu1 %629, %v24_v6   ;;  %v45_v23 = vld [vmem:[%s919_s1 + $0xe8] sm:$0xff]  ;;  %v60_v25 = vld [vmem:[%s920_s2 + $0x60] sm:$0xf]  ;;  %v22_v27 = vld [vmem:[%s919_s1 + $0x30] sm:$0xff] }
   0xc   :  { %v21_v24 = vld [vmem:[%s919_s1 + $0x28] sm:$0xff]  ;;  %551 = vmatpush.msk.msra.mxu0 %vm352_vm0, %v60_v25  ;;  %585 = vmatpush.msk.msra.mxu2 %vm352_vm0, %v60_v25  ;;  %v38_v28 = vld [vmem:[%s919_s1 + $0xb0] sm:$0xff]  ;;  %v56_v32 = vld [vmem:[%s920_s2 + $0x40] sm:$0xff] }
   0xd   :  { %v46_v29 = vld [vmem:[%s919_s1 + $0xf0] sm:$0xff]  ;;  %584 = vmatpush.msk.msra.mxu1 %vm352_vm0, %v60_v25  ;;  %586 = vmatpush.msk.msra.mxu3 %vm352_vm0, %v60_v25  ;;  %v57_v31 = vld [vmem:[%s920_s2 + $0x48] sm:$0xff]  ;;  %v47_v33 = vld [vmem:[%s919_s1 + $0xf8] sm:$0xff] }
   0xe   :  { %360 = vmatpush.msra.mxu0 %v59_v26  ;;  %588 = vmatpush.msra.mxu2 %v59_v26  ;;  %v58_v30 = vld [vmem:[%s920_s2 + $0x50] sm:$0xff]  ;;  %v55_v34 = vld [vmem:[%s920_s2 + $0x38] sm:$0xff]  ;;  %v53_v38 = vld [vmem:[%s920_s2 + $0x28] sm:$0xff] }
   0xf   :  { %587 = vmatpush.msra.mxu1 %v59_v26  ;;  %589 = vmatpush.msra.mxu3 %v59_v26  ;;  %v30_v35 = vld [vmem:[%s919_s1 + $0x70] sm:$0xff]  ;;  %v39_v36 = vld [vmem:[%s919_s1 + $0xb8] sm:$0xff]  ;;  %v52_v39 = vld [vmem:[%s920_s2 + $0x20] sm:$0xff] }
  0x10   :  { %361 = vmatpush.msra.mxu0 %v58_v30  ;;  %591 = vmatpush.msra.mxu2 %v58_v30  ;;  %v54_v37 = vld [vmem:[%s920_s2 + $0x30] sm:$0xff]  ;;  %v51_v40 = vld [vmem:[%s920_s2 + $0x18] sm:$0xff]  ;;  %v49_v44 = vld [vmem:[%s920_s2 + $0x8] sm:$0xff] }
  0x11   :  { %590 = vmatpush.msra.mxu1 %v58_v30  ;;  %592 = vmatpush.msra.mxu3 %v58_v30  ;;  %v23_v41 = vld [vmem:[%s919_s1 + $0x38] sm:$0xff]  ;;  %v50_v43 = vld [vmem:[%s920_s2 + $0x10] sm:$0xff]  ;;  %v48_v45 = vld [vmem:[%s920_s2] sm:$0xff]  ;;  %s659_s2 = smov [#allocation3]  }
  0x12   :  { %118 = vperm.xlu2 %630, %v34_v7   ;;  %362 = vmatpush.msra.mxu0 %v57_v31  ;;  %v31_v42 = vld [vmem:[%s919_s1 + $0x78] sm:$0xff]  ;;  %s505_s17 = sshll.u32 %s659_s2, 4  ;;  %s506_s17 = int_to_ptr.vmem [resolvable:$true] %s505_s17 }
  0x13   :  { %67 = vperm.xlu0 %628, %v17_v8   ;;  %91 = vperm.xlu1 %629, %v25_v9  }
  0x14   :  { %594 = vmatpush.msra.mxu2 %v57_v31  ;;  %593 = vmatpush.msra.mxu1 %v57_v31 }
  0x15   :  { %363 = vmatpush.msra.mxu0 %v56_v32  ;;  %595 = vmatpush.msra.mxu3 %v57_v31 }
  0x16   :  { %597 = vmatpush.msra.mxu2 %v56_v32  ;;  %596 = vmatpush.msra.mxu1 %v56_v32 }
  0x17   :  { %364 = vmatpush.msra.mxu0 %v55_v34  ;;  %598 = vmatpush.msra.mxu3 %v56_v32 }
  0x18   :  { %600 = vmatpush.msra.mxu2 %v55_v34  ;;  %599 = vmatpush.msra.mxu1 %v55_v34 }
  0x19   :  { %365 = vmatpush.msra.mxu0 %v54_v37  ;;  %601 = vmatpush.msra.mxu3 %v55_v34 }
  0x1a   :  { %94 = vperm.xlu2 %630, %v26_v10   ;;  %603 = vmatpush.msra.mxu2 %v54_v37 }
  0x1b   :  { %142 = vperm.xlu0 %628, %v42_v11   ;;  %70 = vperm.xlu1 %629, %v18_v12  }
  0x1c   :  { %366 = vmatpush.msra.mxu0 %v53_v38  ;;  %602 = vmatpush.msra.mxu1 %v54_v37 }
  0x1d   :  { %606 = vmatpush.msra.mxu2 %v53_v38  ;;  %604 = vmatpush.msra.mxu3 %v54_v37 }
  0x1e   :  { %367 = vmatpush.msra.mxu0 %v52_v39  ;;  %605 = vmatpush.msra.mxu1 %v53_v38 }
  0x1f   :  { %609 = vmatpush.msra.mxu2 %v52_v39  ;;  %607 = vmatpush.msra.mxu3 %v53_v38 }
  0x20   :  { %368 = vmatpush.msra.mxu0 %v51_v40  ;;  %608 = vmatpush.msra.mxu1 %v52_v39 }
  0x21   :  { %612 = vmatpush.msra.mxu2 %v51_v40  ;;  %610 = vmatpush.msra.mxu3 %v52_v39 }
  0x22   :  { %73 = vperm.xlu2 %630, %v19_v13   ;;  %369 = vmatpush.msra.mxu0 %v50_v43 }
  0x23   :  { %121 = vperm.xlu0 %628, %v35_v14   ;;  %145 = vperm.xlu1 %629, %v43_v15  }
  0x24   :  { %615 = vmatpush.msra.mxu2 %v50_v43  ;;  %370 = vmatpush.msra.mxu0 %v49_v44 }
  0x25   :  { %611 = vmatpush.msra.mxu1 %v51_v40  ;;  %613 = vmatpush.msra.mxu3 %v51_v40 }
  0x26   :  { %618 = vmatpush.msra.mxu2 %v49_v44  ;;  %371 = vmatpush.msra.mxu0 %v48_v45 }
  0x27   :  { %614 = vmatpush.msra.mxu1 %v50_v43  ;;  %616 = vmatpush.msra.mxu3 %v50_v43 }
  0x28   :  { %621 = vmatpush.msra.mxu2 %v48_v45 }
  0x29   :  { %617 = vmatpush.msra.mxu1 %v49_v44  ;;  %619 = vmatpush.msra.mxu3 %v49_v44 }
  0x2a   :  { %148 = vperm.xlu2 %630, %v44_v16  }
  0x2b   :  { %97 = vperm.xlu0 %628, %v27_v17   ;;  %124 = vperm.xlu1 %629, %v36_v18  }
  0x2c   :  { %620 = vmatpush.msra.mxu1 %v48_v45  ;;  %622 = vmatpush.msra.mxu3 %v48_v45 }
  0x32   :  { %127 = vperm.xlu2 %630, %v37_v19  }
  0x33   :  { %76 = vperm.xlu0 %628, %v20_v20   ;;  %100 = vperm.xlu1 %629, %v28_v21  }
  0x3a   :  { %103 = vperm.xlu2 %630, %v29_v22  }
  0x3b   :  { %151 = vperm.xlu0 %628, %v45_v23   ;;  %79 = vperm.xlu1 %629, %v21_v24  }
  0x42   :  { %82 = vperm.xlu2 %630, %v22_v27  }
  0x43   :  { %130 = vperm.xlu0 %628, %v38_v28   ;;  %154 = vperm.xlu1 %629, %v46_v29  }
  0x4a   :  { %157 = vperm.xlu2 %630, %v47_v33  }
  0x4b   :  { %106 = vperm.xlu0 %628, %v30_v35   ;;  %133 = vperm.xlu1 %629, %v39_v36  }
  0x53   :  { %85 = vperm.xlu0 %628, %v23_v41   ;;  %109 = vperm.xlu1 %629, %v31_v42  }
  0x5c   :  { %v116_v46 = vpop.permute.xlu2 %115 }
  0x5d   :  { %vm176_vm4 = vcmp.eq.s32.totalorder %v817_v49, %v116_v46 }
  0x5e   :  { %v536_v59 = vsel %vm176_vm4, 1.0, %v658_v53 }
  0x64   :  { %v140_v47 = vpop.permute.xlu2 %139 }
  0x65   :  { %vm184_vm7 = vcmp.eq.s32.totalorder %v817_v49, %v140_v47 }
  0x66   :  { %v544_v2 = vsel %vm184_vm7, 1.0, %v658_v53 }
  0x6c   :  { %v119_v50 = vpop.permute.xlu2 %118 }
  0x6d   :  { %vm177_vm8 = vcmp.eq.s32.totalorder %v817_v49, %v119_v50 }
  0x6e   :  { %v537_v3 = vsel %vm177_vm8, 1.0, %v658_v53 }
  0x74   :  { %v95_v58 = vpop.permute.xlu2 %94 }
  0x75   :  { %v113_v51 = vpop.permute.xlu0 %112  ;;  %v65_v52 = vpop.permute.xlu1 %64  ;;  %vm169_vm11 = vcmp.eq.s32.totalorder %v817_v49, %v95_v58 }
  0x76   :  { %vm175_vm2 = vcmp.eq.s32.totalorder %v817_v49, %v113_v51  ;;  %vm159_vm3 = vcmp.eq.s32.totalorder %v817_v49, %v65_v52  ;;  %v529_v7 = vsel %vm169_vm11, 1.0, %v658_v53 }
  0x77   :  { %v535_v54 = vsel %vm175_vm2, 1.0, %v658_v53  ;;  %v519_v55 = vsel %vm159_vm3, 1.0, %v658_v53 }
  0x78   :  { %552 = vmatmul.msk.f32.vlgmr.msra.gmra.mxu0 %vm255_vm1, %v519_v55  ;;  %568 = vmatmul.msk.f32.vlgmr.msra.gmra.mxu2 %vm255_vm1, %v535_v54 }
  0x7c   :  { %v74_v4 = vpop.permute.xlu2 %73 }
  0x7d   :  { %v137_v56 = vpop.permute.xlu0 %136  ;;  %v89_v57 = vpop.permute.xlu1 %88  ;;  %vm162_vm14 = vcmp.eq.s32.totalorder %v817_v49, %v74_v4 }
  0x7e   :  { %vm183_vm5 = vcmp.eq.s32.totalorder %v817_v49, %v137_v56  ;;  %vm167_vm6 = vcmp.eq.s32.totalorder %v817_v49, %v89_v57  ;;  %v522_v13 = vsel %vm162_vm14, 1.0, %v658_v53 }
  0x7f   :  { %v543_v60 = vsel %vm183_vm5, 1.0, %v658_v53  ;;  %v527_v61 = vsel %vm167_vm6, 1.0, %v658_v53 }
  0x80   :  { %560 = vmatmul.msk.f32.vlgmr.msra.gmra.mxu1 %vm255_vm1, %v527_v61  ;;  %569 = vmatmul.msk.f32.gmra.mxu2 %vm255_vm1, %v536_v59 }
  0x81   :  { %576 = vmatmul.msk.f32.vlgmr.msra.gmra.mxu3 %vm255_vm1, %v543_v60 }
  0x84   :  { %v149_v10 = vpop.permute.xlu2 %148 }
  0x85   :  { %v68_v62 = vpop.permute.xlu0 %67  ;;  %v92_v63 = vpop.permute.xlu1 %91  ;;  %vm187_vm2 = vcmp.eq.s32.totalorder %v817_v49, %v149_v10 }
  0x86   :  { %vm160_vm9 = vcmp.eq.s32.totalorder %v817_v49, %v68_v62  ;;  %vm168_vm10 = vcmp.eq.s32.totalorder %v817_v49, %v92_v63  ;;  %v547_v21 = vsel %vm187_vm2, 1.0, %v658_v53 }
  0x87   :  { %v520_v0 = vsel %vm160_vm9, 1.0, %v658_v53  ;;  %v528_v1 = vsel %vm168_vm10, 1.0, %v658_v53 }
  0x88   :  { %553 = vmatmul.msk.f32.gmra.mxu0 %vm255_vm1, %v520_v0  ;;  %561 = vmatmul.msk.f32.gmra.mxu1 %vm255_vm1, %v528_v1 }
  0x89   :  { %570 = vmatmul.msk.f32.gmra.mxu2 %vm255_vm1, %v537_v3  ;;  %577 = vmatmul.msk.f32.gmra.mxu3 %vm255_vm1, %v544_v2 }
  0x8c   :  { %v128_v16 = vpop.permute.xlu2 %127 }
  0x8d   :  { %v143_v5 = vpop.permute.xlu0 %142  ;;  %v71_v6 = vpop.permute.xlu1 %70  ;;  %vm180_vm5 = vcmp.eq.s32.totalorder %v817_v49, %v128_v16 }
  0x8e   :  { %vm185_vm12 = vcmp.eq.s32.totalorder %v817_v49, %v143_v5  ;;  %vm161_vm13 = vcmp.eq.s32.totalorder %v817_v49, %v71_v6  ;;  %v540_v27 = vsel %vm180_vm5, 1.0, %v658_v53 }
  0x8f   :  { %v545_v8 = vsel %vm185_vm12, 1.0, %v658_v53  ;;  %v521_v9 = vsel %vm161_vm13, 1.0, %v658_v53 }
  0x90   :  { %554 = vmatmul.msk.f32.gmra.mxu0 %vm255_vm1, %v521_v9  ;;  %562 = vmatmul.msk.f32.gmra.mxu1 %vm255_vm1, %v529_v7 }
  0x91   :  { %578 = vmatmul.msk.f32.gmra.mxu3 %vm255_vm1, %v545_v8 }
  0x94   :  { %v104_v24 = vpop.permute.xlu2 %103 }
  0x95   :  { %v122_v11 = vpop.permute.xlu0 %121  ;;  %v146_v12 = vpop.permute.xlu1 %145  ;;  %vm172_vm8 = vcmp.eq.s32.totalorder %v817_v49, %v104_v24 }
  0x96   :  { %vm178_vm15 = vcmp.eq.s32.totalorder %v817_v49, %v122_v11  ;;  %vm186_vm0 = vcmp.eq.s32.totalorder %v817_v49, %v146_v12  ;;  %v532_v30 = vsel %vm172_vm8, 1.0, %v658_v53 }
  0x97   :  { %v538_v14 = vsel %vm178_vm15, 1.0, %v658_v53  ;;  %v546_v15 = vsel %vm186_vm0, 1.0, %v658_v53 }
  0x98   :  { %555 = vmatmul.msk.f32.gmra.mxu0 %vm255_vm1, %v522_v13  ;;  %571 = vmatmul.msk.f32.gmra.mxu2 %vm255_vm1, %v538_v14 }
  0x99   :  { %579 = vmatmul.msk.f32.gmra.mxu3 %vm255_vm1, %v546_v15 }
  0x9c   :  { %v83_v33 = vpop.permute.xlu2 %82 }
  0x9d   :  { %v98_v17 = vpop.permute.xlu0 %97  ;;  %v125_v18 = vpop.permute.xlu1 %124  ;;  %vm165_vm11 = vcmp.eq.s32.totalorder %v817_v49, %v83_v33 }
  0x9e   :  { %vm170_vm3 = vcmp.eq.s32.totalorder %v817_v49, %v98_v17  ;;  %vm179_vm4 = vcmp.eq.s32.totalorder %v817_v49, %v125_v18  ;;  %v525_v36 = vsel %vm165_vm11, 1.0, %v658_v53 }
  0x9f   :  { %v530_v19 = vsel %vm170_vm3, 1.0, %v658_v53  ;;  %v539_v20 = vsel %vm179_vm4, 1.0, %v658_v53 }
  0xa0   :  { %563 = vmatmul.msk.f32.gmra.mxu1 %vm255_vm1, %v530_v19  ;;  %572 = vmatmul.msk.f32.gmra.mxu2 %vm255_vm1, %v539_v20 }
  0xa1   :  { %580 = vmatmul.msk.f32.gmra.mxu3 %vm255_vm1, %v547_v21 }
  0xa4   :  { %v158_v39 = vpop.permute.xlu2 %157 }
  0xa5   :  { %v77_v22 = vpop.permute.xlu0 %76  ;;  %v101_v23 = vpop.permute.xlu1 %100  ;;  %vm190_vm14 = vcmp.eq.s32.totalorder %v817_v49, %v158_v39 }
  0xa6   :  { %vm163_vm6 = vcmp.eq.s32.totalorder %v817_v49, %v77_v22  ;;  %vm171_vm7 = vcmp.eq.s32.totalorder %v817_v49, %v101_v23  ;;  %v550_v44 = vsel %vm190_vm14, 1.0, %v658_v53 }
  0xa7   :  { %v523_v25 = vsel %vm163_vm6, 1.0, %v658_v53  ;;  %v531_v26 = vsel %vm171_vm7, 1.0, %v658_v53 }
  0xa8   :  { %556 = vmatmul.msk.f32.gmra.mxu0 %vm255_vm1, %v523_v25  ;;  %564 = vmatmul.msk.f32.gmra.mxu1 %vm255_vm1, %v531_v26 }
  0xa9   :  { %573 = vmatmul.msk.f32.gmra.mxu2 %vm255_vm1, %v540_v27 }
  0xad   :  { %v152_v28 = vpop.permute.xlu0 %151  ;;  %v80_v29 = vpop.permute.xlu1 %79 }
  0xae   :  { %vm188_vm9 = vcmp.eq.s32.totalorder %v817_v49, %v152_v28  ;;  %vm164_vm10 = vcmp.eq.s32.totalorder %v817_v49, %v80_v29 }
  0xaf   :  { %v548_v31 = vsel %vm188_vm9, 1.0, %v658_v53  ;;  %v524_v32 = vsel %vm164_vm10, 1.0, %v658_v53 }
  0xb0   :  { %557 = vmatmul.msk.f32.gmra.mxu0 %vm255_vm1, %v524_v32  ;;  %565 = vmatmul.msk.f32.gmra.mxu1 %vm255_vm1, %v532_v30 }
  0xb1   :  { %581 = vmatmul.msk.f32.gmra.mxu3 %vm255_vm1, %v548_v31 }
  0xb5   :  { %v131_v34 = vpop.permute.xlu0 %130  ;;  %v155_v35 = vpop.permute.xlu1 %154 }
  0xb6   :  { %vm181_vm12 = vcmp.eq.s32.totalorder %v817_v49, %v131_v34  ;;  %vm189_vm13 = vcmp.eq.s32.totalorder %v817_v49, %v155_v35 }
  0xb7   :  { %v541_v37 = vsel %vm181_vm12, 1.0, %v658_v53  ;;  %v549_v38 = vsel %vm189_vm13, 1.0, %v658_v53 }
  0xb8   :  { %558 = vmatmul.msk.f32.gmra.mxu0 %vm255_vm1, %v525_v36  ;;  %574 = vmatmul.msk.f32.gmra.mxu2 %vm255_vm1, %v541_v37 }
  0xb9   :  { %582 = vmatmul.msk.f32.gmra.mxu3 %vm255_vm1, %v549_v38 }
  0xbd   :  { %v107_v40 = vpop.permute.xlu0 %106  ;;  %v134_v41 = vpop.permute.xlu1 %133 }
  0xbe   :  { %vm173_vm15 = vcmp.eq.s32.totalorder %v817_v49, %v107_v40  ;;  %vm182_vm0 = vcmp.eq.s32.totalorder %v817_v49, %v134_v41 }
  0xbf   :  { %v533_v42 = vsel %vm173_vm15, 1.0, %v658_v53  ;;  %v542_v43 = vsel %vm182_vm0, 1.0, %v658_v53 }
  0xc0   :  { %566 = vmatmul.msk.f32.gmra.mxu1 %vm255_vm1, %v533_v42  ;;  %575 = vmatmul.msk.f32.gmra.mxu2 %vm255_vm1, %v542_v43 }
  0xc1   :  { %583 = vmatmul.msk.f32.gmra.mxu3 %vm255_vm1, %v550_v44 }
  0xc5   :  { %v86_v45 = vpop.permute.xlu0 %85  ;;  %v110_v46 = vpop.permute.xlu1 %109 }
  0xc6   :  { %vm166_vm2 = vcmp.eq.s32.totalorder %v817_v49, %v86_v45  ;;  %vm174_vm3 = vcmp.eq.s32.totalorder %v817_v49, %v110_v46 }
  0xc7   :  { %v526_v47 = vsel %vm166_vm2, 1.0, %v658_v53  ;;  %v534_v48 = vsel %vm174_vm3, 1.0, %v658_v53 }
  0xc8   :  { %559 = vmatmul.msk.f32.gmra.mxu0 %vm255_vm1, %v526_v47  ;;  %567 = vmatmul.msk.f32.gmra.mxu1 %vm255_vm1, %v534_v48 }
  0xf5   :  { %v373_v50 = vpop.f32.mrf.mxu0 }
  0xf6   :  { %469 = vst [vmem:[#allocation3] sm:$0xff] %v373_v50 }
  0xfb   :  { %v421_v51 = vpop.f32.mrf.mxu2 }
  0xfc   :  { %485 = vst [vmem:[#allocation3 + $0x80] sm:$0xff] %v421_v51 }
  0xfd   :  { %v397_v52 = vpop.f32.mrf.mxu1 }
  0xfe   :  { %477 = vst [vmem:[#allocation3 + $0x40] sm:$0xff] %v397_v52 }
 0x103   :  { %v424_v54 = vpop.f32.mrf.mxu2 }
 0x104   :  { %486 = vst [vmem:[#allocation3 + $0x88] sm:$0xff] %v424_v54  ;;  %v445_v55 = vpop.f32.mrf.mxu3 }
 0x105   :  { %493 = vst [vmem:[#allocation3 + $0xc0] sm:$0xff] %v445_v55  ;;  %v376_v56 = vpop.f32.mrf.mxu0  ;;  %v400_v49 = vpop.f32.mrf.mxu1 }
 0x106   :  { %470 = vst [vmem:[#allocation3 + $0x8] sm:$0xff] %v376_v56 }
 0x107   :  { %478 = vst [vmem:[#allocation3 + $0x48] sm:$0xff] %v400_v49 }
 0x10c   :  { %v427_v57 = vpop.f32.mrf.mxu2  ;;  %v448_v53 = vpop.f32.mrf.mxu3 }
 0x10d   :  { %487 = vst [vmem:[#allocation3 + $0x90] sm:$0xff] %v427_v57  ;;  %v379_v58 = vpop.f32.mrf.mxu0  ;;  %v403_v59 = vpop.f32.mrf.mxu1 }
 0x10e   :  { %494 = vst [vmem:[#allocation3 + $0xc8] sm:$0xff] %v448_v53 }
 0x10f   :  { %471 = vst [vmem:[#allocation3 + $0x10] sm:$0xff] %v379_v58 }
 0x110   :  { %479 = vst [vmem:[#allocation3 + $0x50] sm:$0xff] %v403_v59 }
 0x114   :  { %v451_v60 = vpop.f32.mrf.mxu3 }
 0x115   :  { %495 = vst [vmem:[#allocation3 + $0xd0] sm:$0xff] %v451_v60  ;;  %v382_v61 = vpop.f32.mrf.mxu0 }
 0x116   :  { %472 = vst [vmem:[#allocation3 + $0x18] sm:$0xff] %v382_v61 }
 0x11b   :  { %v430_v62 = vpop.f32.mrf.mxu2 }
 0x11c   :  { %488 = vst [vmem:[#allocation3 + $0x98] sm:$0xff] %v430_v62  ;;  %v454_v63 = vpop.f32.mrf.mxu3 }
 0x11d   :  { %496 = vst [vmem:[#allocation3 + $0xd8] sm:$0xff] %v454_v63  ;;  %v406_v0 = vpop.f32.mrf.mxu1 }
 0x11e   :  { %480 = vst [vmem:[#allocation3 + $0x58] sm:$0xff] %v406_v0 }
 0x123   :  { %v433_v1 = vpop.f32.mrf.mxu2 }
 0x124   :  { %489 = vst [vmem:[#allocation3 + $0xa0] sm:$0xff] %v433_v1  ;;  %v457_v2 = vpop.f32.mrf.mxu3 }
 0x125   :  { %497 = vst [vmem:[#allocation3 + $0xe0] sm:$0xff] %v457_v2  ;;  %v385_v3 = vpop.f32.mrf.mxu0  ;;  %v409_v4 = vpop.f32.mrf.mxu1 }
 0x126   :  { %473 = vst [vmem:[#allocation3 + $0x20] sm:$0xff] %v385_v3 }
 0x127   :  { %481 = vst [vmem:[#allocation3 + $0x60] sm:$0xff] %v409_v4 }
 0x12c   :  { %v436_v5 = vpop.f32.mrf.mxu2 }
 0x12d   :  { %490 = vst [vmem:[#allocation3 + $0xa8] sm:$0xff] %v436_v5  ;;  %v388_v6 = vpop.f32.mrf.mxu0  ;;  %v412_v7 = vpop.f32.mrf.mxu1 }
 0x12e   :  { %474 = vst [vmem:[#allocation3 + $0x28] sm:$0xff] %v388_v6 }
 0x12f   :  { %482 = vst [vmem:[#allocation3 + $0x68] sm:$0xff] %v412_v7 }
 0x134   :  { %v460_v8 = vpop.f32.mrf.mxu3 }
 0x135   :  { %498 = vst [vmem:[#allocation3 + $0xe8] sm:$0xff] %v460_v8  ;;  %v391_v9 = vpop.f32.mrf.mxu0 }
 0x136   :  { %475 = vst [vmem:[#allocation3 + $0x30] sm:$0xff] %v391_v9 }
 0x13b   :  { %v439_v10 = vpop.f32.mrf.mxu2 }
 0x13c   :  { %491 = vst [vmem:[#allocation3 + $0xb0] sm:$0xff] %v439_v10  ;;  %v463_v11 = vpop.f32.mrf.mxu3 }
 0x13d   :  { %499 = vst [vmem:[#allocation3 + $0xf0] sm:$0xff] %v463_v11  ;;  %v415_v12 = vpop.f32.mrf.mxu1 }
 0x13e   :  { %483 = vst [vmem:[#allocation3 + $0x70] sm:$0xff] %v415_v12 }
 0x143   :  { %v442_v13 = vpop.f32.mrf.mxu2 }
 0x144   :  { %492 = vst [vmem:[#allocation3 + $0xb8] sm:$0xff] %v442_v13  ;;  %v466_v14 = vpop.f32.mrf.mxu3 }
 0x145   :  { %500 = vst [vmem:[#allocation3 + $0xf8] sm:$0xff] %v466_v14  ;;  %v394_v15 = vpop.f32.mrf.mxu0  ;;  %v418_v16 = vpop.f32.mrf.mxu1 }
 0x146   :  { %476 = vst [vmem:[#allocation3 + $0x38] sm:$0xff] %v394_v15 }
 0x147   :  { %484 = vst [vmem:[#allocation3 + $0x78] sm:$0xff] %v418_v16 }
 0x148   :  { %513 = dma.vmem_to_hbm [thread:$0]  %s506_s17, 4096, %s508_s19, [#allocation4], %s660_s20, %s660_s20, %s661_s21  }
 0x149   :  { %655 = dma.done.wait [#allocation4], 4096  }
 0x14a   :  { %656 = vsyncadd [#allocation4], 4294963200 }
 0x14b   :  { %518 = vsyncpa [#allocation4], 1 }

</bundles_post_ra>
